<compile_context>
chip_gen: v5e
topology: v5e:2x2
jax: 0.10.0
libtpu: 0.0.40
codegen_flags: <defaults>
</compile_context>

<pallas_src>
import math
import functools

import jax
import jax.numpy as jnp
import numpy as np
from jax.experimental import pallas as pl
from jax.experimental.pallas import tpu as pltpu


def _lp_kernel(x_ref, w_ref, b_ref, o_ref, *, compute_dtype):
    """One (batch, spatial-tile) block.

    x_ref: (1, Cin, T)   activation tile (spatial on lanes), input dtype
    w_ref: (Cout, Cin)   resident projection weight (nn.Linear layout)
    b_ref: (Cout, 1)     bias, f32
    o_ref: (1, Cout, T)  output tile (spatial on lanes, lane-dense)
    """
    x = x_ref[0]
    w = w_ref[...]
    if compute_dtype is not None:
        # In-kernel cast: VPU work hidden under the MXU, no extra HBM pass.
        if x.dtype != jnp.dtype(compute_dtype):
            x = x.astype(compute_dtype)
        if w.dtype != jnp.dtype(compute_dtype):
            w = w.astype(compute_dtype)
    acc = jnp.dot(w, x, preferred_element_type=jnp.float32)   # (Cout, T), f32
    acc = acc + b_ref[...]                                     # lane-broadcast bias
    o_ref[0] = acc.astype(o_ref.dtype)


def _pick_spatial_tile(B, Cin, Cout, HW, bytes_x_in, bytes_x_compute,
                       bytes_w, bytes_out, vmem_limit, t_hw_max):
    """Largest lane-dense spatial tile that fits the per-generation VMEM."""
    if HW < 128:
        return HW  # block equals the full array dim -> layout rule satisfied
    # Fixed footprint: resident weight (budgeted at 2x in case single
    # buffering is unavailable) + bias.
    fixed = 2 * Cout * Cin * bytes_w + 2 * Cout * 4
    # Per-T footprint: double-buffered input/output tiles + in-kernel cast
    # temporary + f32 accumulator temporary.
    per_t = (2 * Cin * bytes_x_in + 2 * Cout * bytes_out
             + Cin * bytes_x_compute + Cout * 4)
    budget = int(0.7 * vmem_limit) - fixed
    t_fit = 128
    if budget > per_t * 128:
        t_fit = (budget // per_t) // 128 * 128
    t = max(128, min(t_fit, max(128, int(t_hw_max) // 128 * 128),
                     (HW // 128) * 128))
    # Keep enough grid steps to hide the input DMA behind the MXU and to give
    # both v7x TensorCores several steps each.
    while t > 128 and B * pl.cdiv(HW, t) < 4:
        t = max(128, (t // 2) // 128 * 128)
    return t


def lp_pallas(x_nchw, weight, bias, *, compute_dtype=jnp.bfloat16,
              out_dtype=None, t_hw_max=2048):
    """Pallas equivalent of LP.forward.

    x_nchw: (B, Cin, H, W)
    weight: (Cout, Cin)   -- nn.Linear weight layout
    bias:   (Cout,)
    compute_dtype: MXU input dtype (default bf16, f32 accumulate). Pass None
                   for an exact f32 path.
    out_dtype: output dtype (default: input dtype).
    returns (B, Cout, H, W)
    """
    B, Cin, H, W = x_nchw.shape
    Cout, Cin_w = weight.shape
    assert Cin_w == Cin, (Cin_w, Cin)
    assert bias.shape == (Cout,), bias.shape

    HW = H * W
    if out_dtype is None:
        out_dtype = x_nchw.dtype

    # Free reshape: channels-first layout needs no HBM transpose in or out.
    x = x_nchw.reshape(B, Cin, HW)

    # The resident weight is tiny: cast it once wrapper-side (also halves its
    # DMA bytes).  The big activation tensor is cast inside the kernel.
    if compute_dtype is not None and weight.dtype != jnp.dtype(compute_dtype):
        weight = weight.astype(compute_dtype)
    b2d = bias.reshape(Cout, 1).astype(jnp.float32)

    bytes_x_in = jnp.dtype(x.dtype).itemsize
    bytes_x_c = (jnp.dtype(compute_dtype).itemsize
                 if compute_dtype is not None else bytes_x_in)
    bytes_w = jnp.dtype(weight.dtype).itemsize
    bytes_out = jnp.dtype(out_dtype).itemsize

    # Per-generation VMEM: 128 MiB on v5e/v6e, 64 MiB per TensorCore on v7x.
    try:
        vmem_cap = int(pltpu.get_tpu_info().vmem_capacity_bytes)
    except Exception:
        vmem_cap = 64 * 1024 * 1024        # conservative (v7x per-TC)
    vmem_limit = max(32 * 1024 * 1024,
                     min(vmem_cap * 3 // 4, 100 * 1024 * 1024))

    t = _pick_spatial_tile(B, Cin, Cout, HW, bytes_x_in, bytes_x_c,
                           bytes_w, bytes_out, vmem_limit, t_hw_max)
    grid = (B, pl.cdiv(HW, t))

    cost = pl.CostEstimate(
        flops=2 * B * Cout * Cin * HW,
        transcendentals=0,
        bytes_accessed=(B * Cin * HW * bytes_x_in + Cout * Cin * bytes_w
                        + Cout * 4 + B * Cout * HW * bytes_out))

    kernel = functools.partial(_lp_kernel, compute_dtype=compute_dtype)

    def build(single_buffer_consts):
        # Constant-index blocks (weight/bias) gain nothing from a second
        # buffer; single-buffer them to reclaim VMEM for the spatial tile.
        const_kw = ({"pipeline_mode": pl.Buffered(1)}
                    if single_buffer_consts else {})
        return pl.pallas_call(
            kernel,
            out_shape=jax.ShapeDtypeStruct((B, Cout, HW), out_dtype),
            grid_spec=pltpu.PrefetchScalarGridSpec(
                num_scalar_prefetch=0,
                grid=grid,
                in_specs=[
                    pl.BlockSpec((1, Cin, t), lambda b, j: (b, 0, j)),
                    pl.BlockSpec((Cout, Cin), lambda b, j: (0, 0), **const_kw),
                    pl.BlockSpec((Cout, 1), lambda b, j: (0, 0), **const_kw),
                ],
                out_specs=pl.BlockSpec((1, Cout, t), lambda b, j: (b, 0, j)),
            ),
            compiler_params=pltpu.CompilerParams(
                # Both axes independent -> megacore sharding on v7x.
                dimension_semantics=("parallel", "parallel"),
                vmem_limit_bytes=int(vmem_limit),
            ),
            cost_estimate=cost,
        )

    try:
        out = build(True)(x, weight, b2d)
    except Exception:
        # pipeline_mode=pl.Buffered(1) unsupported on this jax version;
        # fall back to default double buffering (only costs some VMEM).
        out = build(False)(x, weight, b2d)

    return out.reshape(B, Cout, H, W)


def reference_jax(x_nchw, weight, bias):
    y = jnp.einsum("bchw,oc->bohw",
                   x_nchw.astype(jnp.float32), weight.astype(jnp.float32),
                   precision=jax.lax.Precision.HIGHEST)
    return y + bias.astype(jnp.float32)[None, :, None, None]


if __name__ == "__main__":
    # Small shapes consistent with the module (input_dim -> embed_dim per
    # pixel), lane-friendly: B=2, Cin=256, H=W=16 (HW=256), Cout=128.
    B, CIN, H, W = 2, 256, 16, 16
    COUT = 128

    key = jax.random.PRNGKey(0)
    kx, kw, kb = jax.random.split(key, 3)

    x = jax.random.normal(kx, (B, CIN, H, W), dtype=jnp.float32)

    # nn.Linear default init: U(-1/sqrt(fan_in), 1/sqrt(fan_in)).
    bound = 1.0 / math.sqrt(CIN)
    weight = jax.random.uniform(kw, (COUT, CIN), jnp.float32, -bound, bound)
    bias = jax.random.uniform(kb, (COUT,), jnp.float32, -bound, bound)

    # 1) Exact-precision path (f32 MXU) vs f32 reference.
    out_f32 = jax.block_until_ready(lp_pallas(x, weight, bias, compute_dtype=None))
    ref_f32 = jax.block_until_ready(reference_jax(x, weight, bias))
    assert out_f32.shape == (B, COUT, H, W), out_f32.shape
    np.testing.assert_allclose(np.asarray(out_f32), np.asarray(ref_f32),
                               rtol=1e-4, atol=1e-4)

    # 2) Default fast path: bf16 MXU inputs, f32 accumulate.  Compare against
    #    a reference that uses identically bf16-rounded inputs.
    out_bf = jax.block_until_ready(lp_pallas(x, weight, bias))
    ref_bf = jax.block_until_ready(reference_jax(
        x.astype(jnp.bfloat16).astype(jnp.float32),
        weight.astype(jnp.bfloat16).astype(jnp.float32),
        bias))
    assert out_bf.shape == (B, COUT, H, W), out_bf.shape
    np.testing.assert_allclose(np.asarray(out_bf), np.asarray(ref_bf),
                               rtol=5e-3, atol=5e-3)

    print("KERNEL_OK")
</pallas_src>

<mosaic_0001>
module attributes {stable_mosaic.version = 11 : i64} {
  func.func @_lp_kernel(%arg0: i32, %arg1: i32, %arg2: memref<1x256x128xf32, #tpu.memory_space<vmem>>, %arg3: memref<128x256xf32, #tpu.memory_space<vmem>>, %arg4: memref<128x1xf32, #tpu.memory_space<vmem>>, %arg5: memref<1x128x128xf32, #tpu.memory_space<vmem>>) attributes {dimension_semantics = [#tpu.dimension_semantics<parallel>, #tpu.dimension_semantics<parallel>], iteration_bounds = array<i64: 2, 2>, scalar_prefetch = 0 : i64, scratch_operands = 0 : i64, tpu.core_type = #tpu.core_type<tc>, window_params = [{transform_indices = @transform_0, window_bounds = array<i64: 1, 256, 128>}, {pipeline_mode = #tpu.pipeline_mode<synchronous>, transform_indices = @transform_1, window_bounds = array<i64: 128, 256>}, {pipeline_mode = #tpu.pipeline_mode<synchronous>, transform_indices = @transform_2, window_bounds = array<i64: 128, 1>}, {transform_indices = @transform_3, window_bounds = array<i64: 1, 128, 128>}]} {
    %c0 = arith.constant 0 : index
    %c0_0 = arith.constant 0 : index
    %c0_1 = arith.constant 0 : index
    %0 = vector.load %arg2[%c0, %c0_0, %c0_1] : memref<1x256x128xf32, #tpu.memory_space<vmem>>, vector<1x256x128xf32>
    %1 = vector.shape_cast %0 : vector<1x256x128xf32> to vector<256x128xf32>
    %c0_2 = arith.constant 0 : index
    %c0_3 = arith.constant 0 : index
    %2 = vector.load %arg3[%c0_2, %c0_3] : memref<128x256xf32, #tpu.memory_space<vmem>>, vector<128x256xf32>
    %cst = arith.constant dense<0.000000e+00> : vector<128x128xf32>
    %3 = tpu.matmul %2, %1, %cst {dimension_numbers = #tpu.dot_dimension_numbers<[1], [0], [0], [1], [0, 0, 1, 1], [], []>} : vector<128x256xf32>, vector<256x128xf32>, vector<128x128xf32> -> vector<128x128xf32>
    %c0_4 = arith.constant 0 : index
    %c0_5 = arith.constant 0 : index
    %4 = vector.load %arg4[%c0_4, %c0_5] : memref<128x1xf32, #tpu.memory_space<vmem>>, vector<128x1xf32>
    %5 = vector.broadcast %4 : vector<128x1xf32> to vector<128x128xf32>
    %6 = arith.addf %3, %5 : vector<128x128xf32>
    %c0_6 = arith.constant 0 : index
    %c0_7 = arith.constant 0 : index
    %c0_8 = arith.constant 0 : index
    %7 = vector.load %arg5[%c0_6, %c0_7, %c0_8] : memref<1x128x128xf32, #tpu.memory_space<vmem>>, vector<1x128x128xf32>
    %8 = vector.shape_cast %7 : vector<1x128x128xf32> to vector<128x128xf32>
    %9 = vector.shape_cast %6 : vector<128x128xf32> to vector<1x128x128xf32>
    tpu.vector_store %arg5[%c0_6, %c0_7, %c0_8], %9 {strides = array<i32>} : memref<1x128x128xf32, #tpu.memory_space<vmem>>, vector<1x128x128xf32>,
    return
  }
  func.func @transform_0(%arg0: i32, %arg1: i32) -> (i32, i32, i32) {
    %c0_i32 = arith.constant 0 : i32
    %c0_i32_0 = arith.constant 0 : i32
    return %arg0, %c0_i32, %arg1 : i32, i32, i32
  }
  func.func @transform_1(%arg0: i32, %arg1: i32) -> (i32, i32) {
    %c0_i32 = arith.constant 0 : i32
    %c0_i32_0 = arith.constant 0 : i32
    %c0_i32_1 = arith.constant 0 : i32
    return %c0_i32, %c0_i32_0 : i32, i32
  }
  func.func @transform_2(%arg0: i32, %arg1: i32) -> (i32, i32) {
    %c0_i32 = arith.constant 0 : i32
    %c0_i32_0 = arith.constant 0 : i32
    %c0_i32_1 = arith.constant 0 : i32
    return %c0_i32, %c0_i32_0 : i32, i32
  }
  func.func @transform_3(%arg0: i32, %arg1: i32) -> (i32, i32, i32) {
    %c0_i32 = arith.constant 0 : i32
    %c0_i32_0 = arith.constant 0 : i32
    return %arg0, %c0_i32, %arg1 : i32, i32, i32
  }
}

module attributes {stable_mosaic.version = 11 : i64} {
  func.func @_lp_kernel(%arg0: i32, %arg1: i32, %arg2: memref<1x256x128xf32, #tpu.memory_space<vmem>>, %arg3: memref<128x256xf32, #tpu.memory_space<vmem>>, %arg4: memref<128x1xf32, #tpu.memory_space<vmem>>, %arg5: memref<1x128x128xf32, #tpu.memory_space<vmem>>) attributes {dimension_semantics = [#tpu.dimension_semantics<parallel>, #tpu.dimension_semantics<parallel>], iteration_bounds = array<i64: 2, 2>, scalar_prefetch = 0 : i64, scratch_operands = 0 : i64, tpu.core_type = #tpu.core_type<tc>, window_params = [{transform_indices = @transform_0, window_bounds = array<i64: 1, 256, 128>}, {pipeline_mode = #tpu.pipeline_mode<synchronous>, transform_indices = @transform_1, window_bounds = array<i64: 128, 256>}, {pipeline_mode = #tpu.pipeline_mode<synchronous>, transform_indices = @transform_2, window_bounds = array<i64: 128, 1>}, {transform_indices = @transform_3, window_bounds = array<i64: 1, 128, 128>}]} {
    %c0 = arith.constant 0 : index
    %c0_0 = arith.constant 0 : index
    %c0_1 = arith.constant 0 : index
    %0 = vector.load %arg2[%c0, %c0_0, %c0_1] : memref<1x256x128xf32, #tpu.memory_space<vmem>>, vector<1x256x128xf32>
    %1 = vector.shape_cast %0 : vector<1x256x128xf32> to vector<256x128xf32>
    %c0_2 = arith.constant 0 : index
    %c0_3 = arith.constant 0 : index
    %2 = vector.load %arg3[%c0_2, %c0_3] : memref<128x256xf32, #tpu.memory_space<vmem>>, vector<128x256xf32>
    %cst = arith.constant dense<0.000000e+00> : vector<128x128xf32>
    %3 = tpu.matmul %2, %1, %cst {dimension_numbers = #tpu.dot_dimension_numbers<[1], [0], [0], [1], [0, 0, 1, 1], [], []>} : vector<128x256xf32>, vector<256x128xf32>, vector<128x128xf32> -> vector<128x128xf32>
    %c0_4 = arith.constant 0 : index
    %c0_5 = arith.constant 0 : index
    %4 = vector.load %arg4[%c0_4, %c0_5] : memref<128x1xf32, #tpu.memory_space<vmem>>, vector<128x1xf32>
    %5 = vector.broadcast %4 : vector<128x1xf32> to vector<128x128xf32>
    %6 = arith.addf %3, %5 : vector<128x128xf32>
    %c0_6 = arith.constant 0 : index
    %c0_7 = arith.constant 0 : index
    %c0_8 = arith.constant 0 : index
    %7 = vector.load %arg5[%c0_6, %c0_7, %c0_8] : memref<1x128x128xf32, #tpu.memory_space<vmem>>, vector<1x128x128xf32>
    %8 = vector.shape_cast %7 : vector<1x128x128xf32> to vector<128x128xf32>
    %9 = vector.shape_cast %6 : vector<128x128xf32> to vector<1x128x128xf32>
    tpu.vector_store %arg5[%c0_6, %c0_7, %c0_8], %9 {strides = array<i32>} : memref<1x128x128xf32, #tpu.memory_space<vmem>>, vector<1x128x128xf32>,
    return
  }
  func.func @transform_0(%arg0: i32, %arg1: i32) -> (i32, i32, i32) {
    %c0_i32 = arith.constant 0 : i32
    %c0_i32_0 = arith.constant 0 : i32
    return %arg0, %c0_i32, %arg1 : i32, i32, i32
  }
  func.func @transform_1(%arg0: i32, %arg1: i32) -> (i32, i32) {
    %c0_i32 = arith.constant 0 : i32
    %c0_i32_0 = arith.constant 0 : i32
    %c0_i32_1 = arith.constant 0 : i32
    return %c0_i32, %c0_i32_0 : i32, i32
  }
  func.func @transform_2(%arg0: i32, %arg1: i32) -> (i32, i32) {
    %c0_i32 = arith.constant 0 : i32
    %c0_i32_0 = arith.constant 0 : i32
    %c0_i32_1 = arith.constant 0 : i32
    return %c0_i32, %c0_i32_0 : i32, i32
  }
  func.func @transform_3(%arg0: i32, %arg1: i32) -> (i32, i32, i32) {
    %c0_i32 = arith.constant 0 : i32
    %c0_i32_0 = arith.constant 0 : i32
    return %arg0, %c0_i32, %arg1 : i32, i32, i32
  }
}

</mosaic_0001>

<bundles_post_ra>
// kernel: tpu_custom_call.1
= control target key start
LH: loop header
LB: loop body
LE: loop exit
PB: predicated region body
PF: predicated region fallthrough
CT: control target
= control target key end

     0   :  { %s1272_s0 = inlined_call_operand.hbm [shape: f32[2,256,256], index: 0, kind: input, shape index: {}]   ;;  %s1273_s1 = inlined_call_operand.hbm [shape: f32[128,256], index: 1, kind: input, shape index: {}]   ;;  %s1274_s2 = inlined_call_operand.vmem [shape: f32[128,1], index: 2, kind: input, shape index: {}]   ;;  %s1275_s3 = inlined_call_operand.hbm [shape: f32[2,128,256], index: 3, kind: output, shape index: {}]  }
   0x1   :  { %1283 = sst [smem:[#allocation16_spill]] %s1273_s1 }
   0x2   :  { %8 = vsyncpa [#allocation3], 0 }
   0x3   :  { %10 = vsyncpa [#allocation3 + $0x1], 0 }
   0x4   :  { %11 = vsyncpa [#allocation6], 0 }
   0x5   :  { %12 = vsyncpa [#allocation4], 0 }
   0x6   :  { %14 = vsyncpa [#allocation4 + $0x1], 0  ;;  %s988_s12 = smov 0   ;;  %s990_s13 = smov 0  }
   0x7   :  { %s992_s14 = smov 0   ;;  %s994_s15 = smov 0  }
   0x8   :  { %s996_s16 = smov 0   ;;  %s998_s17 = smov 0  }
   0x9   :  { %s1000_s18 = smov 0   ;;  %s1002_s19 = smov 0  }
   0xa LB: > { %1284 = sst [smem:[#allocation11_spill]] %s929_s12  ;;  %s646_s20 = sadd.s32 4294967295, %s957_s19   ;;  %s957_s19 = sphi %s1002_s19, %s20_s19   ;;  %s953_s18 = sphi %s1000_s18, %s1309_s18   ;;  %s949_s17 = sphi %s998_s17, %s1308_s17   ;;  %s945_s16 = sphi %s996_s16, %s1307_s16   ;;  %s941_s15 = sphi %s994_s15, %s1306_s15   ;;  %s937_s14 = sphi %s992_s14, %s1305_s14   ;;  %s933_s13 = sphi %s990_s13, %s1304_s13   ;;  %s929_s12 = sphi %s988_s12, %s1303_s12  }
   0xb   : > { %s647_s21 = sadd.s32 4294967294, %s957_s19   ;;  %p54_p0 = scmp.ne.s32.totalorder %s933_s13, %s929_s12 }
   0xc   : > { %p1032_p1 = scmp.eq.s32.totalorder %s646_s20, 0  ;;  %p1036_p2 = scmp.eq.s32.totalorder %s646_s20, 3 }
   0xd   : > { %p128_p3 = scmp.eq.s32.totalorder %s647_s21, 3  ;;  %p648_p5 = scmp.ge.s32.totalorder %s957_s19, 1 }
   0xe   : > { %p1042_p4 = por %p1032_p1, %p54_p0  ;;  %p135_p7 = scmp.lt.s32.totalorder %s957_s19, 5 }
   0xf   : > { %p1047_p6 = por %p128_p3, %p54_p0  ;;  %s1290_s1 = sld [smem:[#allocation16_spill]] }
  0x10   : > { %p1055_p8 = pnand %p648_p5, %p135_p7  ;;  %s959_s30 = smov [#allocation5]  }
  0x11   : > { %s1288_s25 = scalar_select %p1047_p6, 1, 0 }
  0x12   : > { %p703_p9 = pneg %p1055_p8  ;;  %s148_s4 = sshll.u32 %s959_s30, 4  ;;  %s149_s4 = int_to_ptr.vmem [resolvable:$true] %s148_s4 }
  0x13   : > { %1289 = sst [smem:[#allocation12_spill]] %s1288_s25  ;;  %s1276_s5 = smov 256  }
  0x14   : > { %p704_p10 = pnand %p703_p9, %p1032_p1  ;;  %s961_s6 = smov 16  }
  0x15   : > { %s146_s28 = sshll.u32 %s1290_s1, 4  ;;  %s29_s7 = sadd.s32 1, %s949_s17  ;;  %s147_s28 = int_to_ptr.hbm [resolvable:$true] %s146_s28 }
  0x16   : > { %706 = dma.hbm_to_vmem [thread:$0]  (!%p704_p10), %s147_s28, 4096, %s149_s4, [#allocation6], %s1276_s5, %s1276_s5, %s961_s6  }
  0x17   : > { %p30_p11 = scmp.ge.s32.totalorder %s29_s7, 2  ;;  %s32_s8 = sadd.s32 1, %s953_s18 }
  0x18   : > { %s41_s9 = sadd.s32 1, %s937_s14  ;;  %p48_p12 = scmp.ne.s32.totalorder %s937_s14, %s933_s13 }
  0x19   : > { %s1311_s7 = smov (%p30_p11, %s29_s7), 0  ;;  %s1313_s8 = smov (!%p30_p11, %s32_s8), %s953_s18 }
  0x1a   : > { %1292 = sst [smem:[#allocation13_spill]] %s1311_s7  ;;  %s37_s10 = ssub.s32 %s949_s17, %s1311_s7 }
  0x1b   : > { %p49_p13 = scmp.eq.s32.totalorder %s957_s19, 0  ;;  %p34_p0 = scmp.ge.s32.totalorder %s1313_s8, 2 }
  0x1c   : > { %p1078_p3 = por %p1036_p2, %p48_p12  ;;  %p716_p7 = scmp.lt.s32.totalorder %s957_s19, 4 }
  0x1d   : > { %p1082_p5 = por %p49_p13, %p48_p12  ;;  %s1315_s8 = smov (%p34_p0, %s1313_s8), 0 }
  0x1e   : > { %s1293_s11 = scalar_select %p1078_p3, 1, 0 }
  0x1f   : > { %1296 = sst [smem:[#allocation15_spill]] %s1315_s8  ;;  %s165_s21 = sand.u32 1, %s937_s14  }
  0x20   : > { %1294 = sst [smem:[#allocation14_spill]] %s1293_s11  ;;  %s652_s26 = sshll.u32 %s953_s18, 6 }
  0x21   : > { %s36_s27 = ssub.s32 %s953_s18, %s1315_s8  ;;  %s651_s30 = sshll.u32 %s165_s21, 8 }
  0x22   : > { %s38_s28 = sor.u32 %s37_s10, %s36_s27  ;;  %s173_s23 = sadd.s32 %s949_s17, %s652_s26 }
  0x23   : > { %p39_p9 = scmp.eq.s32.totalorder %s38_s28, 0  ;;  %s169_s4 = scalar_lea.vmem [#allocation2], %s651_s30 }
  0x24   : > { %s178_s6 = sshll.u32 %s169_s4, 4  ;;  %s653_s1 = sshll.u32 %s173_s23, 3  ;;  %s179_s6 = int_to_ptr.vmem [resolvable:$true] %s178_s6 }
  0x25   : > { %s1095_s5 = scalar_select %p39_p9, %s937_s14, %s41_s9  }
  0x26   : > { %s175_s12 = scalar_lea.hbm %s1272_s0, %s653_s1  ;;  %p708_p2 = pnand %p716_p7, %p1082_p5 }
  0x27   : > { %s176_s11 = sshll.u32 %s175_s12, 4  ;;  %s166_s8 = scalar_lea.sflag [#allocation3], %s165_s21  ;;  %s177_s11 = int_to_ptr.hbm [resolvable:$true] %s176_s11 }
  0x28   : > { %s962_s10 = smov 128   ;;  %s963_s27 = smov 8  }
  0x29   : > { %s1297_s28 = smov 256   ;;  %190 = sbr.rel (%p1055_p8) target bundleno = 281 (0x119), region = 32 }
  0x2a   : > { %710 = dma.hbm_to_vmem [thread:$0]  (!%p708_p2), %s177_s11, 4096, %s179_s6, %s166_s8, %s1297_s28, %s962_s10, %s963_s27  }
  0x2b   : > { %s1108_s9 = sand.u32 (!%p1055_p8), 1, %s933_s13  }
  0x2c   : > { %s655_s1 = sshll.u32 (!%p1055_p8), %s1108_s9, 8  ;;  %s193_s25 = scalar_lea.sflag (!%p1055_p8), [#allocation3], %s1108_s9 }
  0x2d   : > { %s1112_s7 = scalar_lea.vmem (!%p1055_p8), [#allocation2], %s655_s1 }
  0x2e   : > { %916 = dma.done.wait (%p1042_p4), %s193_s25, 4096  }
  0x2f   : > { %918 = vsyncadd (%p1042_p4), %s193_s25, 4294963200 }
  0x30   : > { %920 = dma.done.wait (%p1032_p1), [#allocation6], 4096  }
  0x31   : > { %922 = vsyncadd (%p1032_p1), [#allocation6], 4294963200  ;;  %v964_v0 = vmov 0   ;;  %v240_v1 = vld [vmem:[%s1112_s7 + $0x78] sm:$0xff]  ;;  %v239_v2 = vld [vmem:[%s1112_s7 + $0x70] sm:$0xff]  ;;  %s657_s10 = sshll.u32 %s1108_s9, 7 }
  0x32   : > { %792 = vset.pattern.permute.xlu0 %v964_v0  ;;  %793 = vset.pattern.permute.xlu1 %v964_v0  ;;  %v256_v3 = vld [vmem:[%s1112_s7 + $0xf8] sm:$0xff]  ;;  %v255_v4 = vld [vmem:[%s1112_s7 + $0xf0] sm:$0xff]  ;;  %v238_v5 = vld [vmem:[%s1112_s7 + $0x68] sm:$0xff]  ;;  %s1205_s27 = scalar_lea.vmem [#allocation7], %s657_s10  ;;  %s659_s28 = sshll.u32 %s945_s16, 5 }
  0x33   : > { %794 = vset.pattern.permute.xlu2 %v964_v0  ;;  %385 = vmatpush.msra.mxu0 %v240_v1  ;;  %v254_v6 = vld [vmem:[%s1112_s7 + $0xe8] sm:$0xff]  ;;  %v237_v7 = vld [vmem:[%s1112_s7 + $0x60] sm:$0xff]  ;;  %v236_v9 = vld [vmem:[%s1112_s7 + $0x58] sm:$0xff]  ;;  %s542_s1 = sadd.s32 %s941_s15, %s659_s28  ;;  %s545_s15 = sshll.u32 %s1205_s27, 4  ;;  %s546_s15 = int_to_ptr.vmem [resolvable:$true] %s545_s15 }
  0x34   : > { %663 = vmatpush.msra.mxu2 %v240_v1  ;;  %450 = vmatpush.msra.mxu1 %v256_v3  ;;  %v253_v8 = vld [vmem:[%s1112_s7 + $0xe0] sm:$0xff]  ;;  %v252_v10 = vld [vmem:[%s1112_s7 + $0xd8] sm:$0xff]  ;;  %v235_v11 = vld [vmem:[%s1112_s7 + $0x50] sm:$0xff]  ;;  %s660_s25 = sshll.u32 %s542_s1, 3  ;;  %s532_s29 = scalar_lea.sflag [#allocation4], %s1108_s9 }
  0x35   : > { %679 = vmatpush.msra.mxu3 %v256_v3  ;;  %386 = vmatpush.msra.mxu0 %v239_v2  ;;  %v251_v12 = vld [vmem:[%s1112_s7 + $0xd0] sm:$0xff]  ;;  %v234_v13 = vld [vmem:[%s1112_s7 + $0x48] sm:$0xff]  ;;  %v233_v15 = vld [vmem:[%s1112_s7 + $0x40] sm:$0xff]  ;;  %s544_s12 = scalar_lea.hbm %s1275_s3, %s660_s25  ;;  %s875_s26 = scalar_lea.hbm %s1275_s3, 512 }
  0x36   : > { %664 = vmatpush.msra.mxu2 %v239_v2  ;;  %451 = vmatpush.msra.mxu1 %v255_v4  ;;  %v250_v14 = vld [vmem:[%s1112_s7 + $0xc8] sm:$0xff]  ;;  %v249_v16 = vld [vmem:[%s1112_s7 + $0xc0] sm:$0xff]  ;;  %v232_v17 = vld [vmem:[%s1112_s7 + $0x38] sm:$0xff]  ;;  %s547_s24 = sshll.u32 %s544_s12, 4  ;;  %s548_s24 = int_to_ptr.hbm [resolvable:$true] %s547_s24 }
  0x37   : > { %680 = vmatpush.msra.mxu3 %v255_v4  ;;  %387 = vmatpush.msra.mxu0 %v238_v5  ;;  %v248_v18 = vld [vmem:[%s1112_s7 + $0xb8] sm:$0xff]  ;;  %v231_v19 = vld [vmem:[%s1112_s7 + $0x30] sm:$0xff]  ;;  %v230_v21 = vld [vmem:[%s1112_s7 + $0x28] sm:$0xff]  ;;  %s869_s8 = sshra.s32 %s548_s24, 4  ;;  %s870_s8 = int_to_ptr.hbm [resolvable:$true] %s869_s8 }
  0x38   : > { %665 = vmatpush.msra.mxu2 %v238_v5  ;;  %452 = vmatpush.msra.mxu1 %v254_v6  ;;  %v247_v20 = vld [vmem:[%s1112_s7 + $0xb0] sm:$0xff]  ;;  %v246_v22 = vld [vmem:[%s1112_s7 + $0xa8] sm:$0xff]  ;;  %v229_v23 = vld [vmem:[%s1112_s7 + $0x20] sm:$0xff]  ;;  %s871_s11 = scalar_lea.hbm %s870_s8, 128  ;;  %p876_p10 = scmp.lt.s32.totalorder %s870_s8, %s1275_s3 }
  0x39   : > { %681 = vmatpush.msra.mxu3 %v254_v6  ;;  %388 = vmatpush.msra.mxu0 %v237_v7  ;;  %v289_v24 = vld [vmem:[%s1274_s2] sm:$0xff]  ;;  %v228_v26 = vld [vmem:[%s1112_s7 + $0x18] sm:$0xff]  ;;  %v227_v28 = vld [vmem:[%s1112_s7 + $0x10] sm:$0xff]  ;;  %p872_p1 = scmp.ne.s32.totalorder %s870_s8, %s871_s11  ;;  %p877_p11 = scmp.lt.s32.totalorder %s875_s26, %s871_s11 }
  0x3a   : > { %666 = vmatpush.msra.mxu2 %v237_v7  ;;  %453 = vmatpush.msra.mxu1 %v253_v8  ;;  %v245_v25 = vld [vmem:[%s1112_s7 + $0xa0] sm:$0xff]  ;;  %v244_v27 = vld [vmem:[%s1112_s7 + $0x98] sm:$0xff]  ;;  %v243_v29 = vld [vmem:[%s1112_s7 + $0x90] sm:$0xff] }
  0x3b   : > { %682 = vmatpush.msra.mxu3 %v253_v8  ;;  %389 = vmatpush.msra.mxu0 %v236_v9  ;;  %v226_v30 = vld [vmem:[%s1112_s7 + $0x8] sm:$0xff]  ;;  %v225_v32 = vld [vmem:[%s1112_s7] sm:$0xff]  ;;  %v291_v39 = vld [vmem:[%s1274_s2 + $0x10] sm:$0xff]  ;;  %p873_p4 = pnand %p872_p1, %p1078_p3  ;;  %p878_p12 = por %p877_p11, %p876_p10 }
  0x3c   : > { %667 = vmatpush.msra.mxu2 %v236_v9  ;;  %454 = vmatpush.msra.mxu1 %v252_v10  ;;  %v242_v31 = vld [vmem:[%s1112_s7 + $0x88] sm:$0xff]  ;;  %v257_v33 = vld [vmem:[#allocation5] sm:$0xff]  ;;  %v259_v41 = vld [vmem:[#allocation5 + $0x10] sm:$0xff] }
  0x3d   : > { %683 = vmatpush.msra.mxu3 %v252_v10  ;;  %390 = vmatpush.msra.mxu0 %v235_v11  ;;  %v273_v34 = vld [vmem:[#allocation5 + $0x80] sm:$0xff]  ;;  %v290_v35 = vld [vmem:[%s1274_s2 + $0x8] sm:$0xff]  ;;  %v275_v42 = vld [vmem:[#allocation5 + $0x90] sm:$0xff]  ;;  %p874_p8 = pneg %p873_p4 }
  0x3e   : > { %668 = vmatpush.msra.mxu2 %v235_v11  ;;  %455 = vmatpush.msra.mxu1 %v251_v12  ;;  %v241_v36 = vld [vmem:[%s1112_s7 + $0x80] sm:$0xff]  ;;  %v258_v37 = vld [vmem:[#allocation5 + $0x8] sm:$0xff]  ;;  %v295_v43 = vld [vmem:[%s1274_s2 + $0x30] sm:$0xff] }
  0x3f   : > { %684 = vmatpush.msra.mxu3 %v251_v12  ;;  %391 = vmatpush.msra.mxu0 %v234_v13  ;;  %v274_v38 = vld [vmem:[#allocation5 + $0x88] sm:$0xff]  ;;  %v293_v40 = vld [vmem:[%s1274_s2 + $0x20] sm:$0xff]  ;;  %v260_v44 = vld [vmem:[#allocation5 + $0x18] sm:$0xff]  ;;  %p879_p13 = pnand %p878_p12, %p874_p8 }
  0x40   : > { %669 = vmatpush.msra.mxu2 %v234_v13  ;;  %456 = vmatpush.msra.mxu1 %v250_v14  ;;  %v276_v45 = vld [vmem:[#allocation5 + $0x98] sm:$0xff]  ;;  %v294_v47 = vld [vmem:[%s1274_s2 + $0x28] sm:$0xff]  ;;  %v261_v48 = vld [vmem:[#allocation5 + $0x20] sm:$0xff] }
  0x41   : > { %685 = vmatpush.msra.mxu3 %v250_v14  ;;  %392 = vmatpush.msra.mxu0 %v233_v15  ;;  %v292_v46 = vld [vmem:[%s1274_s2 + $0x18] sm:$0xff]  ;;  %v277_v49 = vld [vmem:[#allocation5 + $0xa0] sm:$0xff]  ;;  %v298_v50 = vld [vmem:[%s1274_s2 + $0x48] sm:$0xff] }
  0x42   : > { %670 = vmatpush.msra.mxu2 %v233_v15  ;;  %457 = vmatpush.msra.mxu1 %v249_v16  ;;  %v262_v51 = vld [vmem:[#allocation5 + $0x28] sm:$0xff]  ;;  %v296_v53 = vld [vmem:[%s1274_s2 + $0x38] sm:$0xff]  ;;  %v297_v54 = vld [vmem:[%s1274_s2 + $0x40] sm:$0xff] }
  0x43   : > { %686 = vmatpush.msra.mxu3 %v249_v16  ;;  %393 = vmatpush.msra.mxu0 %v232_v17  ;;  %v278_v52 = vld [vmem:[#allocation5 + $0xa8] sm:$0xff]  ;;  %v263_v55 = vld [vmem:[#allocation5 + $0x30] sm:$0xff]  ;;  %v301_v57 = vld [vmem:[%s1274_s2 + $0x60] sm:$0xff] }
  0x44   : > { %671 = vmatpush.msra.mxu2 %v232_v17  ;;  %458 = vmatpush.msra.mxu1 %v248_v18  ;;  %v279_v56 = vld [vmem:[#allocation5 + $0xb0] sm:$0xff]  ;;  %v264_v58 = vld [vmem:[#allocation5 + $0x38] sm:$0xff]  ;;  %v265_v62 = vld [vmem:[#allocation5 + $0x40] sm:$0xff] }
  0x45   : > { %687 = vmatpush.msra.mxu3 %v248_v18  ;;  %394 = vmatpush.msra.mxu0 %v231_v19  ;;  %v280_v59 = vld [vmem:[#allocation5 + $0xb8] sm:$0xff]  ;;  %v299_v60 = vld [vmem:[%s1274_s2 + $0x50] sm:$0xff]  ;;  %v281_v63 = vld [vmem:[#allocation5 + $0xc0] sm:$0xff] }
  0x46   : > { %672 = vmatpush.msra.mxu2 %v231_v19  ;;  %459 = vmatpush.msra.mxu1 %v247_v20  ;;  %v300_v61 = vld [vmem:[%s1274_s2 + $0x58] sm:$0xff]  ;;  %v266_v1 = vld [vmem:[#allocation5 + $0x48] sm:$0xff]  ;;  %v303_v4 = vld [vmem:[%s1274_s2 + $0x70] sm:$0xff] }
  0x47   : > { %688 = vmatpush.msra.mxu3 %v247_v20  ;;  %395 = vmatpush.msra.mxu0 %v230_v21  ;;  %v304_v0 = vld [vmem:[%s1274_s2 + $0x78] sm:$0xff]  ;;  %v282_v2 = vld [vmem:[#allocation5 + $0xc8] sm:$0xff]  ;;  %v267_v5 = vld [vmem:[#allocation5 + $0x50] sm:$0xff] }
  0x48   : > { %673 = vmatpush.msra.mxu2 %v230_v21  ;;  %460 = vmatpush.msra.mxu1 %v246_v22  ;;  %v302_v3 = vld [vmem:[%s1274_s2 + $0x68] sm:$0xff]  ;;  %v283_v6 = vld [vmem:[#allocation5 + $0xd0] sm:$0xff]  ;;  %v268_v7 = vld [vmem:[#allocation5 + $0x58] sm:$0xff] }
  0x49   : > { %689 = vmatpush.msra.mxu3 %v246_v22  ;;  %396 = vmatpush.msra.mxu0 %v229_v23  ;;  %v284_v8 = vld [vmem:[#allocation5 + $0xd8] sm:$0xff]  ;;  %v269_v9 = vld [vmem:[#allocation5 + $0x60] sm:$0xff]  ;;  %v270_v11 = vld [vmem:[#allocation5 + $0x68] sm:$0xff] }
  0x4a   : > { %674 = vmatpush.msra.mxu2 %v229_v23  ;;  %307 = vperm.xlu0 %792, %v289_v24   ;;  %v285_v10 = vld [vmem:[#allocation5 + $0xe0] sm:$0xff]  ;;  %v286_v12 = vld [vmem:[#allocation5 + $0xe8] sm:$0xff]  ;;  %v271_v13 = vld [vmem:[#allocation5 + $0x70] sm:$0xff] }
  0x4b   : > { %461 = vmatpush.msra.mxu1 %v245_v25  ;;  %397 = vmatpush.msra.mxu0 %v228_v26  ;;  %v287_v14 = vld [vmem:[#allocation5 + $0xf0] sm:$0xff]  ;;  %v272_v15 = vld [vmem:[#allocation5 + $0x78] sm:$0xff] }
  0x4c   : > { %675 = vmatpush.msra.mxu2 %v228_v26  ;;  %690 = vmatpush.msra.mxu3 %v245_v25  ;;  %v288_v16 = vld [vmem:[#allocation5 + $0xf8] sm:$0xff] }
  0x4d   : > { %462 = vmatpush.msra.mxu1 %v244_v27  ;;  %398 = vmatpush.msra.mxu0 %v227_v28 }
  0x4e   : > { %676 = vmatpush.msra.mxu2 %v227_v28  ;;  %691 = vmatpush.msra.mxu3 %v244_v27 }
  0x4f   : > { %463 = vmatpush.msra.mxu1 %v243_v29  ;;  %399 = vmatpush.msra.mxu0 %v226_v30 }
  0x50   : > { %677 = vmatpush.msra.mxu2 %v226_v30  ;;  %692 = vmatpush.msra.mxu3 %v243_v29 }
  0x51   : > { %464 = vmatpush.msra.mxu1 %v242_v31  ;;  %400 = vmatpush.msra.mxu0 %v225_v32 }
  0x52   : > { %678 = vmatpush.msra.mxu2 %v225_v32  ;;  %693 = vmatpush.msra.mxu3 %v242_v31 }
  0x53   : > { %401 = vmatmul.f32.vlgmr.msra.gmra.mxu0 %v257_v33  ;;  %425 = vmatmul.f32.vlgmr.msra.gmra.mxu2 %v273_v34 }
  0x54   : > { %312 = vperm.xlu0 %792, %v290_v35   ;;  %465 = vmatpush.msra.mxu1 %v241_v36 }
  0x55   : > { %694 = vmatpush.msra.mxu3 %v241_v36  ;;  %466 = vmatmul.f32.vlgmr.msra.gmra.mxu1 %v258_v37 }
  0x56   : > { %490 = vmatmul.f32.vlgmr.msra.gmra.mxu3 %v274_v38  ;;  %317 = vperm.xlu1 %793, %v291_v39  }
  0x57   : > { %327 = vperm.xlu2 %794, %v293_v40  }
  0x5b   : > { %404 = vmatmul.f32.gmra.mxu0 %v259_v41  ;;  %428 = vmatmul.f32.gmra.mxu2 %v275_v42 }
  0x5c   : > { %337 = vperm.xlu0 %792, %v295_v43  }
  0x5d   : > { %469 = vmatmul.f32.gmra.mxu1 %v260_v44 }
  0x5e   : > { %493 = vmatmul.f32.gmra.mxu3 %v276_v45  ;;  %322 = vperm.xlu1 %793, %v292_v46  }
  0x5f   : > { %332 = vperm.xlu2 %794, %v294_v47  }
  0x63   : > { %407 = vmatmul.f32.gmra.mxu0 %v261_v48  ;;  %431 = vmatmul.f32.gmra.mxu2 %v277_v49 }
  0x64   : > { %352 = vperm.xlu0 %792, %v298_v50  }
  0x65   : > { %472 = vmatmul.f32.gmra.mxu1 %v262_v51 }
  0x66   : > { %496 = vmatmul.f32.gmra.mxu3 %v278_v52  ;;  %342 = vperm.xlu1 %793, %v296_v53  }
  0x67   : > { %347 = vperm.xlu2 %794, %v297_v54  }
  0x6b   : > { %410 = vmatmul.f32.gmra.mxu0 %v263_v55  ;;  %434 = vmatmul.f32.gmra.mxu2 %v279_v56 }
  0x6c   : > { %367 = vperm.xlu0 %792, %v301_v57  }
  0x6d   : > { %475 = vmatmul.f32.gmra.mxu1 %v264_v58 }
  0x6e   : > { %499 = vmatmul.f32.gmra.mxu3 %v280_v59  ;;  %357 = vperm.xlu1 %793, %v299_v60  }
  0x6f   : > { %362 = vperm.xlu2 %794, %v300_v61  }
  0x73   : > { %413 = vmatmul.f32.gmra.mxu0 %v265_v62  ;;  %437 = vmatmul.f32.gmra.mxu2 %v281_v63 }
  0x74   : > { %382 = vperm.xlu0 %792, %v304_v0  }
  0x75   : > { %478 = vmatmul.f32.gmra.mxu1 %v266_v1 }
  0x76   : > { %502 = vmatmul.f32.gmra.mxu3 %v282_v2  ;;  %372 = vperm.xlu1 %793, %v302_v3  }
  0x77   : > { %377 = vperm.xlu2 %794, %v303_v4  }
  0x7b   : > { %416 = vmatmul.f32.gmra.mxu0 %v267_v5  ;;  %440 = vmatmul.f32.gmra.mxu2 %v283_v6 }
  0x7d   : > { %481 = vmatmul.f32.gmra.mxu1 %v268_v7 }
  0x7e   : > { %505 = vmatmul.f32.gmra.mxu3 %v284_v8 }
  0x83   : > { %419 = vmatmul.f32.gmra.mxu0 %v269_v9  ;;  %443 = vmatmul.f32.gmra.mxu2 %v285_v10 }
  0x85   : > { %484 = vmatmul.f32.gmra.mxu1 %v270_v11 }
  0x86   : > { %508 = vmatmul.f32.gmra.mxu3 %v286_v12 }
  0x8b   : > { %422 = vmatmul.f32.gmra.mxu0 %v271_v13  ;;  %446 = vmatmul.f32.gmra.mxu2 %v287_v14 }
  0x8d   : > { %487 = vmatmul.f32.gmra.mxu1 %v272_v15 }
  0x8e   : > { %511 = vmatmul.f32.gmra.mxu3 %v288_v16 }
  0xb1   : > { %v328_v18 = vpop.permute.xlu2 %327 }
  0xb9   : > { %v333_v21 = vpop.permute.xlu2 %332 }
  0xbc   : > { %v308_v17 = vpop.permute.xlu0 %307 }
  0xc1   : > { %v348_v28 = vpop.permute.xlu2 %347 }
  0xc6   : > { %v313_v20 = vpop.permute.xlu0 %312 }
  0xc8   : > { %v318_v19 = vpop.permute.xlu1 %317 }
  0xc9   : > { %v363_v56 = vpop.permute.xlu2 %362 }
  0xce   : > { %v1203_v27 = vpop.permute.xlu0 %337 }
  0xd0   : > { %v402_v22 = vpop.f32.mrf.mxu0  ;;  %v323_v24 = vpop.permute.xlu1 %322 }
  0xd1   : > { %v403_v23 = vadd.f32 %v402_v22, %v308_v17 }
  0xd2   : > { %v467_v25 = vpop.f32.mrf.mxu1 }
  0xd3   : > { %v468_v26 = vadd.f32 %v467_v25, %v403_v23 }
  0xd5   : > { %515 = vst [vmem:[%s1205_s27] sm:$0xff] %v468_v26 }
  0xd6   : > { %v426_v29 = vpop.f32.mrf.mxu2  ;;  %v353_v38 = vpop.permute.xlu0 %352 }
  0xd7   : > { %v427_v30 = vadd.f32 %v426_v29, %v348_v28 }
  0xd8   : > { %v405_v31 = vpop.f32.mrf.mxu0  ;;  %v1208_v36 = vpop.permute.xlu1 %342 }
  0xd9   : > { %v406_v32 = vadd.f32 %v405_v31, %v313_v20  ;;  %v491_v33 = vpop.f32.mrf.mxu3 }
  0xda   : > { %v492_v34 = vadd.f32 %v491_v33, %v427_v30  ;;  %v470_v35 = vpop.f32.mrf.mxu1 }
  0xdb   : > { %v471_v37 = vadd.f32 %v470_v35, %v406_v32 }
  0xdc   : > { %523 = vst [vmem:[%s1205_s27 + $0x40] sm:$0xff] %v492_v34 }
  0xdd   : > { %516 = vst [vmem:[%s1205_s27 + $0x8] sm:$0xff] %v471_v37 }
  0xde   : > { %v429_v39 = vpop.f32.mrf.mxu2  ;;  %v368_v1 = vpop.permute.xlu0 %367 }
  0xdf   : > { %v430_v40 = vadd.f32 %v429_v39, %v353_v38 }
  0xe0   : > { %v408_v41 = vpop.f32.mrf.mxu0  ;;  %v358_v47 = vpop.permute.xlu1 %357 }
  0xe1   : > { %v409_v42 = vadd.f32 %v408_v41, %v318_v19  ;;  %v494_v43 = vpop.f32.mrf.mxu3  ;;  %v378_v19 = vpop.permute.xlu2 %377 }
  0xe2   : > { %v495_v44 = vadd.f32 %v494_v43, %v430_v40  ;;  %v473_v45 = vpop.f32.mrf.mxu1 }
  0xe3   : > { %v474_v46 = vadd.f32 %v473_v45, %v409_v42 }
  0xe4   : > { %524 = vst [vmem:[%s1205_s27 + $0x48] sm:$0xff] %v495_v44 }
  0xe5   : > { %517 = vst [vmem:[%s1205_s27 + $0x10] sm:$0xff] %v474_v46 }
  0xe6   : > { %v432_v48 = vpop.f32.mrf.mxu2  ;;  %v383_v28 = vpop.permute.xlu0 %382 }
  0xe7   : > { %v433_v49 = vadd.f32 %v432_v48, %v358_v47 }
  0xe8   : > { %v411_v50 = vpop.f32.mrf.mxu0  ;;  %v373_v10 = vpop.permute.xlu1 %372 }
  0xe9   : > { %v412_v51 = vadd.f32 %v411_v50, %v323_v24  ;;  %v497_v52 = vpop.f32.mrf.mxu3 }
  0xea   : > { %v498_v53 = vadd.f32 %v497_v52, %v433_v49  ;;  %v476_v54 = vpop.f32.mrf.mxu1 }
  0xeb   : > { %v477_v55 = vadd.f32 %v476_v54, %v412_v51 }
  0xec   : > { %525 = vst [vmem:[%s1205_s27 + $0x50] sm:$0xff] %v498_v53 }
  0xed   : > { %518 = vst [vmem:[%s1205_s27 + $0x18] sm:$0xff] %v477_v55 }
  0xee   : > { %v435_v57 = vpop.f32.mrf.mxu2 }
  0xef   : > { %v436_v58 = vadd.f32 %v435_v57, %v363_v56 }
  0xf0   : > { %v414_v59 = vpop.f32.mrf.mxu0 }
  0xf1   : > { %v415_v60 = vadd.f32 %v414_v59, %v328_v18  ;;  %v500_v61 = vpop.f32.mrf.mxu3 }
  0xf2   : > { %v501_v62 = vadd.f32 %v500_v61, %v436_v58  ;;  %v479_v63 = vpop.f32.mrf.mxu1 }
  0xf3   : > { %v480_v0 = vadd.f32 %v479_v63, %v415_v60 }
  0xf4   : > { %526 = vst [vmem:[%s1205_s27 + $0x58] sm:$0xff] %v501_v62 }
  0xf5   : > { %519 = vst [vmem:[%s1205_s27 + $0x20] sm:$0xff] %v480_v0 }
  0xf6   : > { %v438_v2 = vpop.f32.mrf.mxu2 }
  0xf7   : > { %v439_v3 = vadd.f32 %v438_v2, %v368_v1 }
  0xf8   : > { %v417_v4 = vpop.f32.mrf.mxu0 }
  0xf9   : > { %v418_v5 = vadd.f32 %v417_v4, %v333_v21  ;;  %v503_v6 = vpop.f32.mrf.mxu3 }
  0xfa   : > { %v504_v7 = vadd.f32 %v503_v6, %v439_v3  ;;  %v482_v8 = vpop.f32.mrf.mxu1 }
  0xfb   : > { %v483_v9 = vadd.f32 %v482_v8, %v418_v5 }
  0xfc   : > { %527 = vst [vmem:[%s1205_s27 + $0x60] sm:$0xff] %v504_v7 }
  0xfd   : > { %520 = vst [vmem:[%s1205_s27 + $0x28] sm:$0xff] %v483_v9 }
  0xfe   : > { %v441_v11 = vpop.f32.mrf.mxu2 }
  0xff   : > { %v442_v12 = vadd.f32 %v441_v11, %v373_v10 }
 0x100   : > { %v420_v13 = vpop.f32.mrf.mxu0 }
 0x101   : > { %v421_v14 = vadd.f32 %v420_v13, %v1203_v27  ;;  %v506_v15 = vpop.f32.mrf.mxu3 }
 0x102   : > { %v507_v16 = vadd.f32 %v506_v15, %v442_v12  ;;  %v485_v17 = vpop.f32.mrf.mxu1 }
 0x103   : > { %v486_v18 = vadd.f32 %v485_v17, %v421_v14 }
 0x104   : > { %528 = vst [vmem:[%s1205_s27 + $0x68] sm:$0xff] %v507_v16 }
 0x105   : > { %521 = vst [vmem:[%s1205_s27 + $0x30] sm:$0xff] %v486_v18 }
 0x106   : > { %v444_v20 = vpop.f32.mrf.mxu2 }
 0x107   : > { %v445_v21 = vadd.f32 %v444_v20, %v378_v19 }
 0x108   : > { %v423_v22 = vpop.f32.mrf.mxu0 }
 0x109   : > { %v424_v23 = vadd.f32 %v423_v22, %v1208_v36  ;;  %v509_v24 = vpop.f32.mrf.mxu3 }
 0x10a   : > { %v510_v25 = vadd.f32 %v509_v24, %v445_v21  ;;  %v488_v26 = vpop.f32.mrf.mxu1 }
 0x10b   : > { %v489_v27 = vadd.f32 %v488_v26, %v424_v23 }
 0x10c   : > { %529 = vst [vmem:[%s1205_s27 + $0x70] sm:$0xff] %v510_v25 }
 0x10d   : > { %522 = vst [vmem:[%s1205_s27 + $0x38] sm:$0xff] %v489_v27 }
 0x10e   : > { %v447_v29 = vpop.f32.mrf.mxu2 }
 0x10f   : > { %v448_v30 = vadd.f32 %v447_v29, %v383_v28 }
 0x111   : > { %v512_v31 = vpop.f32.mrf.mxu3 }
 0x112   : > { %v513_v32 = vadd.f32 %v512_v31, %v448_v30 }
 0x114   : > { %530 = vst [vmem:[%s1205_s27 + $0x78] sm:$0xff] %v513_v32 }
 0x115   : > { %882 = shalt.err (!%p879_p13)
}
 0x116   : > { %s965_s9 = smov 128   ;;  %s966_s4 = smov 256  }
 0x117   : > { %s967_s6 = smov 8  }
 0x118   : > { %701 = dma.vmem_to_hbm [thread:$0]  (%p1078_p3), %s546_s15, 2048, %s548_s24, %s532_s29, %s965_s9, %s966_s4, %s967_s6  }
 0x119 PF: > { %s1299_s10 = sld [smem:[#allocation11_spill]]  ;;  %p718_p0 = scmp.ge.s32.totalorder %s957_s19, 2 }
 0x11b   : > { %p712_p5 = pnand %p718_p0, %p1047_p6 }
 0x11d   : > { %p713_p7 = pneg %p712_p5 }
 0x11f   : > { %s562_s28 = sand.u32 1, %s1299_s10  }
 0x120   : > { %s563_s1 = scalar_lea.sflag [#allocation4], %s562_s28 }
 0x121   : > { %924 = dma.done.wait (%p713_p7), %s563_s1, 2048  }
 0x122   : > { %926 = vsyncadd (%p713_p7), %s563_s1, 4294965248  ;;  %s20_s19 = sadd.s32 1, %s957_s19   ;;  %s1301_s25 = sld [smem:[#allocation13_spill]] }
 0x123   : > { %p17_p9 = scmp.ge.s32.totalorder %s20_s19, 6   ;;  %s1302_s7 = sld [smem:[#allocation15_spill]] }
 0x124   : > { %s1303_s12 = smov %s933_s13  ;;  %s1304_s13 = smov %s937_s14 }
 0x125   : > { %s1305_s14 = smov %s1095_s5  ;;  %s1306_s15 = smov %s949_s17 }
 0x126   : > { %s1307_s16 = smov %s953_s18  ;;  %19 = sbr.rel (!%p17_p9) target bundleno = 10 (0xa), region = 81 }
 0x128   : > { %s1308_s17 = smov %s1301_s25 }
 0x129   : > { %s1309_s18 = smov %s1302_s7 }
 0x12b   :  { %569 = vsyncpa [#allocation3], 1 }
 0x12c   :  { %571 = vsyncpa [#allocation3 + $0x1], 1 }
 0x12d   :  { %572 = vsyncpa [#allocation6], 1 }
 0x12e   :  { %573 = vsyncpa [#allocation4], 1 }
 0x12f   :  { %575 = vsyncpa [#allocation4 + $0x1], 1 }

// kernel: tpu_custom_call.1
= control target key start
LH: loop header
LB: loop body
LE: loop exit
PB: predicated region body
PF: predicated region fallthrough
CT: control target
= control target key end

     0   :  { %s1272_s0 = inlined_call_operand.hbm [shape: f32[2,256,256], index: 0, kind: input, shape index: {}]   ;;  %s1273_s1 = inlined_call_operand.hbm [shape: f32[128,256], index: 1, kind: input, shape index: {}]   ;;  %s1274_s2 = inlined_call_operand.vmem [shape: f32[128,1], index: 2, kind: input, shape index: {}]   ;;  %s1275_s3 = inlined_call_operand.hbm [shape: f32[2,128,256], index: 3, kind: output, shape index: {}]  }
   0x1   :  { %1283 = sst [smem:[#allocation16_spill]] %s1273_s1 }
   0x2   :  { %8 = vsyncpa [#allocation3], 0 }
   0x3   :  { %10 = vsyncpa [#allocation3 + $0x1], 0 }
   0x4   :  { %11 = vsyncpa [#allocation6], 0 }
   0x5   :  { %12 = vsyncpa [#allocation4], 0 }
   0x6   :  { %14 = vsyncpa [#allocation4 + $0x1], 0  ;;  %s988_s12 = smov 0   ;;  %s990_s13 = smov 0  }
   0x7   :  { %s992_s14 = smov 0   ;;  %s994_s15 = smov 0  }
   0x8   :  { %s996_s16 = smov 0   ;;  %s998_s17 = smov 0  }
   0x9   :  { %s1000_s18 = smov 0   ;;  %s1002_s19 = smov 0  }
   0xa LB: > { %1284 = sst [smem:[#allocation11_spill]] %s929_s12  ;;  %s646_s20 = sadd.s32 4294967295, %s957_s19   ;;  %s957_s19 = sphi %s1002_s19, %s20_s19   ;;  %s953_s18 = sphi %s1000_s18, %s1309_s18   ;;  %s949_s17 = sphi %s998_s17, %s1308_s17   ;;  %s945_s16 = sphi %s996_s16, %s1307_s16   ;;  %s941_s15 = sphi %s994_s15, %s1306_s15   ;;  %s937_s14 = sphi %s992_s14, %s1305_s14   ;;  %s933_s13 = sphi %s990_s13, %s1304_s13   ;;  %s929_s12 = sphi %s988_s12, %s1303_s12  }
   0xb   : > { %s647_s21 = sadd.s32 4294967294, %s957_s19   ;;  %p54_p0 = scmp.ne.s32.totalorder %s933_s13, %s929_s12 }
   0xc   : > { %p1032_p1 = scmp.eq.s32.totalorder %s646_s20, 0  ;;  %p1036_p2 = scmp.eq.s32.totalorder %s646_s20, 3 }
   0xd   : > { %p128_p3 = scmp.eq.s32.totalorder %s647_s21, 3  ;;  %p648_p5 = scmp.ge.s32.totalorder %s957_s19, 1 }
   0xe   : > { %p1042_p4 = por %p1032_p1, %p54_p0  ;;  %p135_p7 = scmp.lt.s32.totalorder %s957_s19, 5 }
   0xf   : > { %p1047_p6 = por %p128_p3, %p54_p0  ;;  %s1290_s1 = sld [smem:[#allocation16_spill]] }
  0x10   : > { %p1055_p8 = pnand %p648_p5, %p135_p7  ;;  %s959_s30 = smov [#allocation5]  }
  0x11   : > { %s1288_s25 = scalar_select %p1047_p6, 1, 0 }
  0x12   : > { %p703_p9 = pneg %p1055_p8  ;;  %s148_s4 = sshll.u32 %s959_s30, 4  ;;  %s149_s4 = int_to_ptr.vmem [resolvable:$true] %s148_s4 }
  0x13   : > { %1289 = sst [smem:[#allocation12_spill]] %s1288_s25  ;;  %s1276_s5 = smov 256  }
  0x14   : > { %p704_p10 = pnand %p703_p9, %p1032_p1  ;;  %s961_s6 = smov 16  }
  0x15   : > { %s146_s28 = sshll.u32 %s1290_s1, 4  ;;  %s29_s7 = sadd.s32 1, %s949_s17  ;;  %s147_s28 = int_to_ptr.hbm [resolvable:$true] %s146_s28 }
  0x16   : > { %706 = dma.hbm_to_vmem [thread:$0]  (!%p704_p10), %s147_s28, 4096, %s149_s4, [#allocation6], %s1276_s5, %s1276_s5, %s961_s6  }
  0x17   : > { %p30_p11 = scmp.ge.s32.totalorder %s29_s7, 2  ;;  %s32_s8 = sadd.s32 1, %s953_s18 }
  0x18   : > { %s41_s9 = sadd.s32 1, %s937_s14  ;;  %p48_p12 = scmp.ne.s32.totalorder %s937_s14, %s933_s13 }
  0x19   : > { %s1311_s7 = smov (%p30_p11, %s29_s7), 0  ;;  %s1313_s8 = smov (!%p30_p11, %s32_s8), %s953_s18 }
  0x1a   : > { %1292 = sst [smem:[#allocation13_spill]] %s1311_s7  ;;  %s37_s10 = ssub.s32 %s949_s17, %s1311_s7 }
  0x1b   : > { %p49_p13 = scmp.eq.s32.totalorder %s957_s19, 0  ;;  %p34_p0 = scmp.ge.s32.totalorder %s1313_s8, 2 }
  0x1c   : > { %p1078_p3 = por %p1036_p2, %p48_p12  ;;  %p716_p7 = scmp.lt.s32.totalorder %s957_s19, 4 }
  0x1d   : > { %p1082_p5 = por %p49_p13, %p48_p12  ;;  %s1315_s8 = smov (%p34_p0, %s1313_s8), 0 }
  0x1e   : > { %s1293_s11 = scalar_select %p1078_p3, 1, 0 }
  0x1f   : > { %1296 = sst [smem:[#allocation15_spill]] %s1315_s8  ;;  %s165_s21 = sand.u32 1, %s937_s14  }
  0x20   : > { %1294 = sst [smem:[#allocation14_spill]] %s1293_s11  ;;  %s652_s26 = sshll.u32 %s953_s18, 6 }
  0x21   : > { %s36_s27 = ssub.s32 %s953_s18, %s1315_s8  ;;  %s651_s30 = sshll.u32 %s165_s21, 8 }
  0x22   : > { %s38_s28 = sor.u32 %s37_s10, %s36_s27  ;;  %s173_s23 = sadd.s32 %s949_s17, %s652_s26 }
  0x23   : > { %p39_p9 = scmp.eq.s32.totalorder %s38_s28, 0  ;;  %s169_s4 = scalar_lea.vmem [#allocation2], %s651_s30 }
  0x24   : > { %s178_s6 = sshll.u32 %s169_s4, 4  ;;  %s653_s1 = sshll.u32 %s173_s23, 3  ;;  %s179_s6 = int_to_ptr.vmem [resolvable:$true] %s178_s6 }
  0x25   : > { %s1095_s5 = scalar_select %p39_p9, %s937_s14, %s41_s9  }
  0x26   : > { %s175_s12 = scalar_lea.hbm %s1272_s0, %s653_s1  ;;  %p708_p2 = pnand %p716_p7, %p1082_p5 }
  0x27   : > { %s176_s11 = sshll.u32 %s175_s12, 4  ;;  %s166_s8 = scalar_lea.sflag [#allocation3], %s165_s21  ;;  %s177_s11 = int_to_ptr.hbm [resolvable:$true] %s176_s11 }
  0x28   : > { %s962_s10 = smov 128   ;;  %s963_s27 = smov 8  }
  0x29   : > { %s1297_s28 = smov 256   ;;  %190 = sbr.rel (%p1055_p8) target bundleno = 281 (0x119), region = 32 }
  0x2a   : > { %710 = dma.hbm_to_vmem [thread:$0]  (!%p708_p2), %s177_s11, 4096, %s179_s6, %s166_s8, %s1297_s28, %s962_s10, %s963_s27  }
  0x2b   : > { %s1108_s9 = sand.u32 (!%p1055_p8), 1, %s933_s13  }
  0x2c   : > { %s655_s1 = sshll.u32 (!%p1055_p8), %s1108_s9, 8  ;;  %s193_s25 = scalar_lea.sflag (!%p1055_p8), [#allocation3], %s1108_s9 }
  0x2d   : > { %s1112_s7 = scalar_lea.vmem (!%p1055_p8), [#allocation2], %s655_s1 }
  0x2e   : > { %916 = dma.done.wait (%p1042_p4), %s193_s25, 4096  }
  0x2f   : > { %918 = vsyncadd (%p1042_p4), %s193_s25, 4294963200 }
  0x30   : > { %920 = dma.done.wait (%p1032_p1), [#allocation6], 4096  }
  0x31   : > { %922 = vsyncadd (%p1032_p1), [#allocation6], 4294963200  ;;  %v964_v0 = vmov 0   ;;  %v240_v1 = vld [vmem:[%s1112_s7 + $0x78] sm:$0xff]  ;;  %v239_v2 = vld [vmem:[%s1112_s7 + $0x70] sm:$0xff]  ;;  %s657_s10 = sshll.u32 %s1108_s9, 7 }
  0x32   : > { %792 = vset.pattern.permute.xlu0 %v964_v0  ;;  %793 = vset.pattern.permute.xlu1 %v964_v0  ;;  %v256_v3 = vld [vmem:[%s1112_s7 + $0xf8] sm:$0xff]  ;;  %v255_v4 = vld [vmem:[%s1112_s7 + $0xf0] sm:$0xff]  ;;  %v238_v5 = vld [vmem:[%s1112_s7 + $0x68] sm:$0xff]  ;;  %s1205_s27 = scalar_lea.vmem [#allocation7], %s657_s10  ;;  %s659_s28 = sshll.u32 %s945_s16, 5 }
  0x33   : > { %794 = vset.pattern.permute.xlu2 %v964_v0  ;;  %385 = vmatpush.msra.mxu0 %v240_v1  ;;  %v254_v6 = vld [vmem:[%s1112_s7 + $0xe8] sm:$0xff]  ;;  %v237_v7 = vld [vmem:[%s1112_s7 + $0x60] sm:$0xff]  ;;  %v236_v9 = vld [vmem:[%s1112_s7 + $0x58] sm:$0xff]  ;;  %s542_s1 = sadd.s32 %s941_s15, %s659_s28  ;;  %s545_s15 = sshll.u32 %s1205_s27, 4  ;;  %s546_s15 = int_to_ptr.vmem [resolvable:$true] %s545_s15 }
  0x34   : > { %663 = vmatpush.msra.mxu2 %v240_v1  ;;  %450 = vmatpush.msra.mxu1 %v256_v3  ;;  %v253_v8 = vld [vmem:[%s1112_s7 + $0xe0] sm:$0xff]  ;;  %v252_v10 = vld [vmem:[%s1112_s7 + $0xd8] sm:$0xff]  ;;  %v235_v11 = vld [vmem:[%s1112_s7 + $0x50] sm:$0xff]  ;;  %s660_s25 = sshll.u32 %s542_s1, 3  ;;  %s532_s29 = scalar_lea.sflag [#allocation4], %s1108_s9 }
  0x35   : > { %679 = vmatpush.msra.mxu3 %v256_v3  ;;  %386 = vmatpush.msra.mxu0 %v239_v2  ;;  %v251_v12 = vld [vmem:[%s1112_s7 + $0xd0] sm:$0xff]  ;;  %v234_v13 = vld [vmem:[%s1112_s7 + $0x48] sm:$0xff]  ;;  %v233_v15 = vld [vmem:[%s1112_s7 + $0x40] sm:$0xff]  ;;  %s544_s12 = scalar_lea.hbm %s1275_s3, %s660_s25  ;;  %s875_s26 = scalar_lea.hbm %s1275_s3, 512 }
  0x36   : > { %664 = vmatpush.msra.mxu2 %v239_v2  ;;  %451 = vmatpush.msra.mxu1 %v255_v4  ;;  %v250_v14 = vld [vmem:[%s1112_s7 + $0xc8] sm:$0xff]  ;;  %v249_v16 = vld [vmem:[%s1112_s7 + $0xc0] sm:$0xff]  ;;  %v232_v17 = vld [vmem:[%s1112_s7 + $0x38] sm:$0xff]  ;;  %s547_s24 = sshll.u32 %s544_s12, 4  ;;  %s548_s24 = int_to_ptr.hbm [resolvable:$true] %s547_s24 }
  0x37   : > { %680 = vmatpush.msra.mxu3 %v255_v4  ;;  %387 = vmatpush.msra.mxu0 %v238_v5  ;;  %v248_v18 = vld [vmem:[%s1112_s7 + $0xb8] sm:$0xff]  ;;  %v231_v19 = vld [vmem:[%s1112_s7 + $0x30] sm:$0xff]  ;;  %v230_v21 = vld [vmem:[%s1112_s7 + $0x28] sm:$0xff]  ;;  %s869_s8 = sshra.s32 %s548_s24, 4  ;;  %s870_s8 = int_to_ptr.hbm [resolvable:$true] %s869_s8 }
  0x38   : > { %665 = vmatpush.msra.mxu2 %v238_v5  ;;  %452 = vmatpush.msra.mxu1 %v254_v6  ;;  %v247_v20 = vld [vmem:[%s1112_s7 + $0xb0] sm:$0xff]  ;;  %v246_v22 = vld [vmem:[%s1112_s7 + $0xa8] sm:$0xff]  ;;  %v229_v23 = vld [vmem:[%s1112_s7 + $0x20] sm:$0xff]  ;;  %s871_s11 = scalar_lea.hbm %s870_s8, 128  ;;  %p876_p10 = scmp.lt.s32.totalorder %s870_s8, %s1275_s3 }
  0x39   : > { %681 = vmatpush.msra.mxu3 %v254_v6  ;;  %388 = vmatpush.msra.mxu0 %v237_v7  ;;  %v289_v24 = vld [vmem:[%s1274_s2] sm:$0xff]  ;;  %v228_v26 = vld [vmem:[%s1112_s7 + $0x18] sm:$0xff]  ;;  %v227_v28 = vld [vmem:[%s1112_s7 + $0x10] sm:$0xff]  ;;  %p872_p1 = scmp.ne.s32.totalorder %s870_s8, %s871_s11  ;;  %p877_p11 = scmp.lt.s32.totalorder %s875_s26, %s871_s11 }
  0x3a   : > { %666 = vmatpush.msra.mxu2 %v237_v7  ;;  %453 = vmatpush.msra.mxu1 %v253_v8  ;;  %v245_v25 = vld [vmem:[%s1112_s7 + $0xa0] sm:$0xff]  ;;  %v244_v27 = vld [vmem:[%s1112_s7 + $0x98] sm:$0xff]  ;;  %v243_v29 = vld [vmem:[%s1112_s7 + $0x90] sm:$0xff] }
  0x3b   : > { %682 = vmatpush.msra.mxu3 %v253_v8  ;;  %389 = vmatpush.msra.mxu0 %v236_v9  ;;  %v226_v30 = vld [vmem:[%s1112_s7 + $0x8] sm:$0xff]  ;;  %v225_v32 = vld [vmem:[%s1112_s7] sm:$0xff]  ;;  %v291_v39 = vld [vmem:[%s1274_s2 + $0x10] sm:$0xff]  ;;  %p873_p4 = pnand %p872_p1, %p1078_p3  ;;  %p878_p12 = por %p877_p11, %p876_p10 }
  0x3c   : > { %667 = vmatpush.msra.mxu2 %v236_v9  ;;  %454 = vmatpush.msra.mxu1 %v252_v10  ;;  %v242_v31 = vld [vmem:[%s1112_s7 + $0x88] sm:$0xff]  ;;  %v257_v33 = vld [vmem:[#allocation5] sm:$0xff]  ;;  %v259_v41 = vld [vmem:[#allocation5 + $0x10] sm:$0xff] }
  0x3d   : > { %683 = vmatpush.msra.mxu3 %v252_v10  ;;  %390 = vmatpush.msra.mxu0 %v235_v11  ;;  %v273_v34 = vld [vmem:[#allocation5 + $0x80] sm:$0xff]  ;;  %v290_v35 = vld [vmem:[%s1274_s2 + $0x8] sm:$0xff]  ;;  %v275_v42 = vld [vmem:[#allocation5 + $0x90] sm:$0xff]  ;;  %p874_p8 = pneg %p873_p4 }
  0x3e   : > { %668 = vmatpush.msra.mxu2 %v235_v11  ;;  %455 = vmatpush.msra.mxu1 %v251_v12  ;;  %v241_v36 = vld [vmem:[%s1112_s7 + $0x80] sm:$0xff]  ;;  %v258_v37 = vld [vmem:[#allocation5 + $0x8] sm:$0xff]  ;;  %v295_v43 = vld [vmem:[%s1274_s2 + $0x30] sm:$0xff] }
  0x3f   : > { %684 = vmatpush.msra.mxu3 %v251_v12  ;;  %391 = vmatpush.msra.mxu0 %v234_v13  ;;  %v274_v38 = vld [vmem:[#allocation5 + $0x88] sm:$0xff]  ;;  %v293_v40 = vld [vmem:[%s1274_s2 + $0x20] sm:$0xff]  ;;  %v260_v44 = vld [vmem:[#allocation5 + $0x18] sm:$0xff]  ;;  %p879_p13 = pnand %p878_p12, %p874_p8 }
  0x40   : > { %669 = vmatpush.msra.mxu2 %v234_v13  ;;  %456 = vmatpush.msra.mxu1 %v250_v14  ;;  %v276_v45 = vld [vmem:[#allocation5 + $0x98] sm:$0xff]  ;;  %v294_v47 = vld [vmem:[%s1274_s2 + $0x28] sm:$0xff]  ;;  %v261_v48 = vld [vmem:[#allocation5 + $0x20] sm:$0xff] }
  0x41   : > { %685 = vmatpush.msra.mxu3 %v250_v14  ;;  %392 = vmatpush.msra.mxu0 %v233_v15  ;;  %v292_v46 = vld [vmem:[%s1274_s2 + $0x18] sm:$0xff]  ;;  %v277_v49 = vld [vmem:[#allocation5 + $0xa0] sm:$0xff]  ;;  %v298_v50 = vld [vmem:[%s1274_s2 + $0x48] sm:$0xff] }
  0x42   : > { %670 = vmatpush.msra.mxu2 %v233_v15  ;;  %457 = vmatpush.msra.mxu1 %v249_v16  ;;  %v262_v51 = vld [vmem:[#allocation5 + $0x28] sm:$0xff]  ;;  %v296_v53 = vld [vmem:[%s1274_s2 + $0x38] sm:$0xff]  ;;  %v297_v54 = vld [vmem:[%s1274_s2 + $0x40] sm:$0xff] }
  0x43   : > { %686 = vmatpush.msra.mxu3 %v249_v16  ;;  %393 = vmatpush.msra.mxu0 %v232_v17  ;;  %v278_v52 = vld [vmem:[#allocation5 + $0xa8] sm:$0xff]  ;;  %v263_v55 = vld [vmem:[#allocation5 + $0x30] sm:$0xff]  ;;  %v301_v57 = vld [vmem:[%s1274_s2 + $0x60] sm:$0xff] }
  0x44   : > { %671 = vmatpush.msra.mxu2 %v232_v17  ;;  %458 = vmatpush.msra.mxu1 %v248_v18  ;;  %v279_v56 = vld [vmem:[#allocation5 + $0xb0] sm:$0xff]  ;;  %v264_v58 = vld [vmem:[#allocation5 + $0x38] sm:$0xff]  ;;  %v265_v62 = vld [vmem:[#allocation5 + $0x40] sm:$0xff] }
  0x45   : > { %687 = vmatpush.msra.mxu3 %v248_v18  ;;  %394 = vmatpush.msra.mxu0 %v231_v19  ;;  %v280_v59 = vld [vmem:[#allocation5 + $0xb8] sm:$0xff]  ;;  %v299_v60 = vld [vmem:[%s1274_s2 + $0x50] sm:$0xff]  ;;  %v281_v63 = vld [vmem:[#allocation5 + $0xc0] sm:$0xff] }
  0x46   : > { %672 = vmatpush.msra.mxu2 %v231_v19  ;;  %459 = vmatpush.msra.mxu1 %v247_v20  ;;  %v300_v61 = vld [vmem:[%s1274_s2 + $0x58] sm:$0xff]  ;;  %v266_v1 = vld [vmem:[#allocation5 + $0x48] sm:$0xff]  ;;  %v303_v4 = vld [vmem:[%s1274_s2 + $0x70] sm:$0xff] }
  0x47   : > { %688 = vmatpush.msra.mxu3 %v247_v20  ;;  %395 = vmatpush.msra.mxu0 %v230_v21  ;;  %v304_v0 = vld [vmem:[%s1274_s2 + $0x78] sm:$0xff]  ;;  %v282_v2 = vld [vmem:[#allocation5 + $0xc8] sm:$0xff]  ;;  %v267_v5 = vld [vmem:[#allocation5 + $0x50] sm:$0xff] }
  0x48   : > { %673 = vmatpush.msra.mxu2 %v230_v21  ;;  %460 = vmatpush.msra.mxu1 %v246_v22  ;;  %v302_v3 = vld [vmem:[%s1274_s2 + $0x68] sm:$0xff]  ;;  %v283_v6 = vld [vmem:[#allocation5 + $0xd0] sm:$0xff]  ;;  %v268_v7 = vld [vmem:[#allocation5 + $0x58] sm:$0xff] }
  0x49   : > { %689 = vmatpush.msra.mxu3 %v246_v22  ;;  %396 = vmatpush.msra.mxu0 %v229_v23  ;;  %v284_v8 = vld [vmem:[#allocation5 + $0xd8] sm:$0xff]  ;;  %v269_v9 = vld [vmem:[#allocation5 + $0x60] sm:$0xff]  ;;  %v270_v11 = vld [vmem:[#allocation5 + $0x68] sm:$0xff] }
  0x4a   : > { %674 = vmatpush.msra.mxu2 %v229_v23  ;;  %307 = vperm.xlu0 %792, %v289_v24   ;;  %v285_v10 = vld [vmem:[#allocation5 + $0xe0] sm:$0xff]  ;;  %v286_v12 = vld [vmem:[#allocation5 + $0xe8] sm:$0xff]  ;;  %v271_v13 = vld [vmem:[#allocation5 + $0x70] sm:$0xff] }
  0x4b   : > { %461 = vmatpush.msra.mxu1 %v245_v25  ;;  %397 = vmatpush.msra.mxu0 %v228_v26  ;;  %v287_v14 = vld [vmem:[#allocation5 + $0xf0] sm:$0xff]  ;;  %v272_v15 = vld [vmem:[#allocation5 + $0x78] sm:$0xff] }
  0x4c   : > { %675 = vmatpush.msra.mxu2 %v228_v26  ;;  %690 = vmatpush.msra.mxu3 %v245_v25  ;;  %v288_v16 = vld [vmem:[#allocation5 + $0xf8] sm:$0xff] }
  0x4d   : > { %462 = vmatpush.msra.mxu1 %v244_v27  ;;  %398 = vmatpush.msra.mxu0 %v227_v28 }
  0x4e   : > { %676 = vmatpush.msra.mxu2 %v227_v28  ;;  %691 = vmatpush.msra.mxu3 %v244_v27 }
  0x4f   : > { %463 = vmatpush.msra.mxu1 %v243_v29  ;;  %399 = vmatpush.msra.mxu0 %v226_v30 }
  0x50   : > { %677 = vmatpush.msra.mxu2 %v226_v30  ;;  %692 = vmatpush.msra.mxu3 %v243_v29 }
  0x51   : > { %464 = vmatpush.msra.mxu1 %v242_v31  ;;  %400 = vmatpush.msra.mxu0 %v225_v32 }
  0x52   : > { %678 = vmatpush.msra.mxu2 %v225_v32  ;;  %693 = vmatpush.msra.mxu3 %v242_v31 }
  0x53   : > { %401 = vmatmul.f32.vlgmr.msra.gmra.mxu0 %v257_v33  ;;  %425 = vmatmul.f32.vlgmr.msra.gmra.mxu2 %v273_v34 }
  0x54   : > { %312 = vperm.xlu0 %792, %v290_v35   ;;  %465 = vmatpush.msra.mxu1 %v241_v36 }
  0x55   : > { %694 = vmatpush.msra.mxu3 %v241_v36  ;;  %466 = vmatmul.f32.vlgmr.msra.gmra.mxu1 %v258_v37 }
  0x56   : > { %490 = vmatmul.f32.vlgmr.msra.gmra.mxu3 %v274_v38  ;;  %317 = vperm.xlu1 %793, %v291_v39  }
  0x57   : > { %327 = vperm.xlu2 %794, %v293_v40  }
  0x5b   : > { %404 = vmatmul.f32.gmra.mxu0 %v259_v41  ;;  %428 = vmatmul.f32.gmra.mxu2 %v275_v42 }
  0x5c   : > { %337 = vperm.xlu0 %792, %v295_v43  }
  0x5d   : > { %469 = vmatmul.f32.gmra.mxu1 %v260_v44 }
  0x5e   : > { %493 = vmatmul.f32.gmra.mxu3 %v276_v45  ;;  %322 = vperm.xlu1 %793, %v292_v46  }
  0x5f   : > { %332 = vperm.xlu2 %794, %v294_v47  }
  0x63   : > { %407 = vmatmul.f32.gmra.mxu0 %v261_v48  ;;  %431 = vmatmul.f32.gmra.mxu2 %v277_v49 }
  0x64   : > { %352 = vperm.xlu0 %792, %v298_v50  }
  0x65   : > { %472 = vmatmul.f32.gmra.mxu1 %v262_v51 }
  0x66   : > { %496 = vmatmul.f32.gmra.mxu3 %v278_v52  ;;  %342 = vperm.xlu1 %793, %v296_v53  }
  0x67   : > { %347 = vperm.xlu2 %794, %v297_v54  }
  0x6b   : > { %410 = vmatmul.f32.gmra.mxu0 %v263_v55  ;;  %434 = vmatmul.f32.gmra.mxu2 %v279_v56 }
  0x6c   : > { %367 = vperm.xlu0 %792, %v301_v57  }
  0x6d   : > { %475 = vmatmul.f32.gmra.mxu1 %v264_v58 }
  0x6e   : > { %499 = vmatmul.f32.gmra.mxu3 %v280_v59  ;;  %357 = vperm.xlu1 %793, %v299_v60  }
  0x6f   : > { %362 = vperm.xlu2 %794, %v300_v61  }
  0x73   : > { %413 = vmatmul.f32.gmra.mxu0 %v265_v62  ;;  %437 = vmatmul.f32.gmra.mxu2 %v281_v63 }
  0x74   : > { %382 = vperm.xlu0 %792, %v304_v0  }
  0x75   : > { %478 = vmatmul.f32.gmra.mxu1 %v266_v1 }
  0x76   : > { %502 = vmatmul.f32.gmra.mxu3 %v282_v2  ;;  %372 = vperm.xlu1 %793, %v302_v3  }
  0x77   : > { %377 = vperm.xlu2 %794, %v303_v4  }
  0x7b   : > { %416 = vmatmul.f32.gmra.mxu0 %v267_v5  ;;  %440 = vmatmul.f32.gmra.mxu2 %v283_v6 }
  0x7d   : > { %481 = vmatmul.f32.gmra.mxu1 %v268_v7 }
  0x7e   : > { %505 = vmatmul.f32.gmra.mxu3 %v284_v8 }
  0x83   : > { %419 = vmatmul.f32.gmra.mxu0 %v269_v9  ;;  %443 = vmatmul.f32.gmra.mxu2 %v285_v10 }
  0x85   : > { %484 = vmatmul.f32.gmra.mxu1 %v270_v11 }
  0x86   : > { %508 = vmatmul.f32.gmra.mxu3 %v286_v12 }
  0x8b   : > { %422 = vmatmul.f32.gmra.mxu0 %v271_v13  ;;  %446 = vmatmul.f32.gmra.mxu2 %v287_v14 }
  0x8d   : > { %487 = vmatmul.f32.gmra.mxu1 %v272_v15 }
  0x8e   : > { %511 = vmatmul.f32.gmra.mxu3 %v288_v16 }
  0xb1   : > { %v328_v18 = vpop.permute.xlu2 %327 }
  0xb9   : > { %v333_v21 = vpop.permute.xlu2 %332 }
  0xbc   : > { %v308_v17 = vpop.permute.xlu0 %307 }
  0xc1   : > { %v348_v28 = vpop.permute.xlu2 %347 }
  0xc6   : > { %v313_v20 = vpop.permute.xlu0 %312 }
  0xc8   : > { %v318_v19 = vpop.permute.xlu1 %317 }
  0xc9   : > { %v363_v56 = vpop.permute.xlu2 %362 }
  0xce   : > { %v1203_v27 = vpop.permute.xlu0 %337 }
  0xd0   : > { %v402_v22 = vpop.f32.mrf.mxu0  ;;  %v323_v24 = vpop.permute.xlu1 %322 }
  0xd1   : > { %v403_v23 = vadd.f32 %v402_v22, %v308_v17 }
  0xd2   : > { %v467_v25 = vpop.f32.mrf.mxu1 }
  0xd3   : > { %v468_v26 = vadd.f32 %v467_v25, %v403_v23 }
  0xd5   : > { %515 = vst [vmem:[%s1205_s27] sm:$0xff] %v468_v26 }
  0xd6   : > { %v426_v29 = vpop.f32.mrf.mxu2  ;;  %v353_v38 = vpop.permute.xlu0 %352 }
  0xd7   : > { %v427_v30 = vadd.f32 %v426_v29, %v348_v28 }
  0xd8   : > { %v405_v31 = vpop.f32.mrf.mxu0  ;;  %v1208_v36 = vpop.permute.xlu1 %342 }
  0xd9   : > { %v406_v32 = vadd.f32 %v405_v31, %v313_v20  ;;  %v491_v33 = vpop.f32.mrf.mxu3 }
  0xda   : > { %v492_v34 = vadd.f32 %v491_v33, %v427_v30  ;;  %v470_v35 = vpop.f32.mrf.mxu1 }
  0xdb   : > { %v471_v37 = vadd.f32 %v470_v35, %v406_v32 }
  0xdc   : > { %523 = vst [vmem:[%s1205_s27 + $0x40] sm:$0xff] %v492_v34 }
  0xdd   : > { %516 = vst [vmem:[%s1205_s27 + $0x8] sm:$0xff] %v471_v37 }
  0xde   : > { %v429_v39 = vpop.f32.mrf.mxu2  ;;  %v368_v1 = vpop.permute.xlu0 %367 }
  0xdf   : > { %v430_v40 = vadd.f32 %v429_v39, %v353_v38 }
  0xe0   : > { %v408_v41 = vpop.f32.mrf.mxu0  ;;  %v358_v47 = vpop.permute.xlu1 %357 }
  0xe1   : > { %v409_v42 = vadd.f32 %v408_v41, %v318_v19  ;;  %v494_v43 = vpop.f32.mrf.mxu3  ;;  %v378_v19 = vpop.permute.xlu2 %377 }
  0xe2   : > { %v495_v44 = vadd.f32 %v494_v43, %v430_v40  ;;  %v473_v45 = vpop.f32.mrf.mxu1 }
  0xe3   : > { %v474_v46 = vadd.f32 %v473_v45, %v409_v42 }
  0xe4   : > { %524 = vst [vmem:[%s1205_s27 + $0x48] sm:$0xff] %v495_v44 }
  0xe5   : > { %517 = vst [vmem:[%s1205_s27 + $0x10] sm:$0xff] %v474_v46 }
  0xe6   : > { %v432_v48 = vpop.f32.mrf.mxu2  ;;  %v383_v28 = vpop.permute.xlu0 %382 }
  0xe7   : > { %v433_v49 = vadd.f32 %v432_v48, %v358_v47 }
  0xe8   : > { %v411_v50 = vpop.f32.mrf.mxu0  ;;  %v373_v10 = vpop.permute.xlu1 %372 }
  0xe9   : > { %v412_v51 = vadd.f32 %v411_v50, %v323_v24  ;;  %v497_v52 = vpop.f32.mrf.mxu3 }
  0xea   : > { %v498_v53 = vadd.f32 %v497_v52, %v433_v49  ;;  %v476_v54 = vpop.f32.mrf.mxu1 }
  0xeb   : > { %v477_v55 = vadd.f32 %v476_v54, %v412_v51 }
  0xec   : > { %525 = vst [vmem:[%s1205_s27 + $0x50] sm:$0xff] %v498_v53 }
  0xed   : > { %518 = vst [vmem:[%s1205_s27 + $0x18] sm:$0xff] %v477_v55 }
  0xee   : > { %v435_v57 = vpop.f32.mrf.mxu2 }
  0xef   : > { %v436_v58 = vadd.f32 %v435_v57, %v363_v56 }
  0xf0   : > { %v414_v59 = vpop.f32.mrf.mxu0 }
  0xf1   : > { %v415_v60 = vadd.f32 %v414_v59, %v328_v18  ;;  %v500_v61 = vpop.f32.mrf.mxu3 }
  0xf2   : > { %v501_v62 = vadd.f32 %v500_v61, %v436_v58  ;;  %v479_v63 = vpop.f32.mrf.mxu1 }
  0xf3   : > { %v480_v0 = vadd.f32 %v479_v63, %v415_v60 }
  0xf4   : > { %526 = vst [vmem:[%s1205_s27 + $0x58] sm:$0xff] %v501_v62 }
  0xf5   : > { %519 = vst [vmem:[%s1205_s27 + $0x20] sm:$0xff] %v480_v0 }
  0xf6   : > { %v438_v2 = vpop.f32.mrf.mxu2 }
  0xf7   : > { %v439_v3 = vadd.f32 %v438_v2, %v368_v1 }
  0xf8   : > { %v417_v4 = vpop.f32.mrf.mxu0 }
  0xf9   : > { %v418_v5 = vadd.f32 %v417_v4, %v333_v21  ;;  %v503_v6 = vpop.f32.mrf.mxu3 }
  0xfa   : > { %v504_v7 = vadd.f32 %v503_v6, %v439_v3  ;;  %v482_v8 = vpop.f32.mrf.mxu1 }
  0xfb   : > { %v483_v9 = vadd.f32 %v482_v8, %v418_v5 }
  0xfc   : > { %527 = vst [vmem:[%s1205_s27 + $0x60] sm:$0xff] %v504_v7 }
  0xfd   : > { %520 = vst [vmem:[%s1205_s27 + $0x28] sm:$0xff] %v483_v9 }
  0xfe   : > { %v441_v11 = vpop.f32.mrf.mxu2 }
  0xff   : > { %v442_v12 = vadd.f32 %v441_v11, %v373_v10 }
 0x100   : > { %v420_v13 = vpop.f32.mrf.mxu0 }
 0x101   : > { %v421_v14 = vadd.f32 %v420_v13, %v1203_v27  ;;  %v506_v15 = vpop.f32.mrf.mxu3 }
 0x102   : > { %v507_v16 = vadd.f32 %v506_v15, %v442_v12  ;;  %v485_v17 = vpop.f32.mrf.mxu1 }
 0x103   : > { %v486_v18 = vadd.f32 %v485_v17, %v421_v14 }
 0x104   : > { %528 = vst [vmem:[%s1205_s27 + $0x68] sm:$0xff] %v507_v16 }
 0x105   : > { %521 = vst [vmem:[%s1205_s27 + $0x30] sm:$0xff] %v486_v18 }
 0x106   : > { %v444_v20 = vpop.f32.mrf.mxu2 }
 0x107   : > { %v445_v21 = vadd.f32 %v444_v20, %v378_v19 }
 0x108   : > { %v423_v22 = vpop.f32.mrf.mxu0 }
 0x109   : > { %v424_v23 = vadd.f32 %v423_v22, %v1208_v36  ;;  %v509_v24 = vpop.f32.mrf.mxu3 }
 0x10a   : > { %v510_v25 = vadd.f32 %v509_v24, %v445_v21  ;;  %v488_v26 = vpop.f32.mrf.mxu1 }
 0x10b   : > { %v489_v27 = vadd.f32 %v488_v26, %v424_v23 }
 0x10c   : > { %529 = vst [vmem:[%s1205_s27 + $0x70] sm:$0xff] %v510_v25 }
 0x10d   : > { %522 = vst [vmem:[%s1205_s27 + $0x38] sm:$0xff] %v489_v27 }
 0x10e   : > { %v447_v29 = vpop.f32.mrf.mxu2 }
 0x10f   : > { %v448_v30 = vadd.f32 %v447_v29, %v383_v28 }
 0x111   : > { %v512_v31 = vpop.f32.mrf.mxu3 }
 0x112   : > { %v513_v32 = vadd.f32 %v512_v31, %v448_v30 }
 0x114   : > { %530 = vst [vmem:[%s1205_s27 + $0x78] sm:$0xff] %v513_v32 }
 0x115   : > { %882 = shalt.err (!%p879_p13)
}
 0x116   : > { %s965_s9 = smov 128   ;;  %s966_s4 = smov 256  }
 0x117   : > { %s967_s6 = smov 8  }
 0x118   : > { %701 = dma.vmem_to_hbm [thread:$0]  (%p1078_p3), %s546_s15, 2048, %s548_s24, %s532_s29, %s965_s9, %s966_s4, %s967_s6  }
 0x119 PF: > { %s1299_s10 = sld [smem:[#allocation11_spill]]  ;;  %p718_p0 = scmp.ge.s32.totalorder %s957_s19, 2 }
 0x11b   : > { %p712_p5 = pnand %p718_p0, %p1047_p6 }
 0x11d   : > { %p713_p7 = pneg %p712_p5 }
 0x11f   : > { %s562_s28 = sand.u32 1, %s1299_s10  }
 0x120   : > { %s563_s1 = scalar_lea.sflag [#allocation4], %s562_s28 }
 0x121   : > { %924 = dma.done.wait (%p713_p7), %s563_s1, 2048  }
 0x122   : > { %926 = vsyncadd (%p713_p7), %s563_s1, 4294965248  ;;  %s20_s19 = sadd.s32 1, %s957_s19   ;;  %s1301_s25 = sld [smem:[#allocation13_spill]] }
 0x123   : > { %p17_p9 = scmp.ge.s32.totalorder %s20_s19, 6   ;;  %s1302_s7 = sld [smem:[#allocation15_spill]] }
 0x124   : > { %s1303_s12 = smov %s933_s13  ;;  %s1304_s13 = smov %s937_s14 }
 0x125   : > { %s1305_s14 = smov %s1095_s5  ;;  %s1306_s15 = smov %s949_s17 }
 0x126   : > { %s1307_s16 = smov %s953_s18  ;;  %19 = sbr.rel (!%p17_p9) target bundleno = 10 (0xa), region = 81 }
 0x128   : > { %s1308_s17 = smov %s1301_s25 }
 0x129   : > { %s1309_s18 = smov %s1302_s7 }
 0x12b   :  { %569 = vsyncpa [#allocation3], 1 }
 0x12c   :  { %571 = vsyncpa [#allocation3 + $0x1], 1 }
 0x12d   :  { %572 = vsyncpa [#allocation6], 1 }
 0x12e   :  { %573 = vsyncpa [#allocation4], 1 }
 0x12f   :  { %575 = vsyncpa [#allocation4 + $0x1], 1 }

</bundles_post_ra>
